<compile_context>
chip_gen: v7x
topology: tpu7x:2x2x1
jax: 0.10.0
libtpu: 0.0.40
codegen_flags: <defaults>
</compile_context>

<pallas_src>
import jax
import jax.numpy as jnp
from jax.experimental import pallas as pl
from jax.experimental.pallas import tpu as pltpu


# ----------------------------------------------------------------------------
# Kernels
# ----------------------------------------------------------------------------
def shrinkage_kernel(x_ref, w1_ref, b1_ref, w2_ref, b2_ref, o_ref):
    """Single-pass kernel: block = (Bn, C, L), full C and L per block."""
    x = x_ref[...]                                         # (Bn, C, L), input dtype
    inv_l = 1.0 / x_ref.shape[-1]

    # GAP(|x|): f32 accumulation without materializing a full-block f32 copy.
    avg = jnp.sum(jnp.abs(x), axis=-1, dtype=jnp.float32) * inv_l       # (Bn, C)

    # fc: Linear -> ReLU -> Linear -> Sigmoid (weights pre-transposed to (in, out)).
    # Weights stay in their native dtype (bf16 is the MXU fast path); accumulate f32.
    h = jnp.maximum(
        jnp.dot(avg.astype(w1_ref.dtype), w1_ref[...],
                preferred_element_type=jnp.float32)
        + b1_ref[...].astype(jnp.float32), 0.0)
    s = jax.nn.sigmoid(
        jnp.dot(h.astype(w2_ref.dtype), w2_ref[...],
                preferred_element_type=jnp.float32)
        + b2_ref[...].astype(jnp.float32))                               # (Bn, C)

    # tau >= 0, so sign(x)*max(|x| - tau, 0) == x - clip(x, -tau, tau).
    tau = (avg * s).astype(x.dtype)[:, :, None]                          # (Bn, C, 1)
    o_ref[...] = (x - jnp.clip(x, -tau, tau)).astype(o_ref.dtype)


def _make_tau_kernel(inv_l):
    """Pass 1 of the L-tiled fallback: per-(n, c) threshold tau, f32 (N, C, 1)."""
    def tau_kernel(x_ref, w1_ref, b1_ref, w2_ref, b2_ref, tau_ref):
        li = pl.program_id(1)

        @pl.when(li == 0)
        def _():
            tau_ref[...] = jnp.zeros_like(tau_ref)

        part = jnp.sum(jnp.abs(x_ref[...]), axis=-1, dtype=jnp.float32)  # (1, C)
        tau_ref[...] += part[:, :, None]                                 # (1, C, 1)

        @pl.when(li == pl.num_programs(1) - 1)
        def _():
            avg = tau_ref[...][:, :, 0] * inv_l                          # (1, C) f32
            h = jnp.maximum(
                jnp.dot(avg.astype(w1_ref.dtype), w1_ref[...],
                        preferred_element_type=jnp.float32)
                + b1_ref[...].astype(jnp.float32), 0.0)
            s = jax.nn.sigmoid(
                jnp.dot(h.astype(w2_ref.dtype), w2_ref[...],
                        preferred_element_type=jnp.float32)
                + b2_ref[...].astype(jnp.float32))
            tau_ref[...] = (avg * s)[:, :, None]
    return tau_kernel


def _apply_kernel(x_ref, tau_ref, o_ref):
    """Pass 2 of the fallback: elementwise soft-threshold, parallel over (N, L)."""
    x = x_ref[...]                                   # (1, C, tl), input dtype
    tau = tau_ref[...].astype(x.dtype)               # (1, C, 1)
    o_ref[...] = (x - jnp.clip(x, -tau, tau)).astype(o_ref.dtype)


# ----------------------------------------------------------------------------
# Wrapper
# ----------------------------------------------------------------------------
def _cdiv(a, b):
    return -(-a // b)


def _tpu_topology():
    """Best-effort (VMEM bytes, TensorCores per chip). Conservative fallbacks."""
    vmem_bytes = 64 << 20            # v7x has the smallest VMEM (64 MiB per TC)
    num_cores = 1
    try:
        info = pltpu.get_tpu_info()
        vmem_bytes = int(getattr(info, "vmem_capacity_bytes", vmem_bytes))
        for name in ("num_tensorcores", "tensorcore_count", "num_cores",
                     "cores_per_chip"):
            val = getattr(info, name, None)
            if val:
                num_cores = int(val)
                break
    except Exception:
        pass
    if num_cores == 1:
        try:
            kind = jax.devices()[0].device_kind.lower()
            if any(t in kind for t in ("v4", "v5p", "7x", "v7")):
                num_cores = 2
        except Exception:
            pass
    return vmem_bytes, max(1, min(num_cores, 2))


def shrinkage(x, w1, b1, w2, b2):
    """x: (N, C, L); w1, w2: (C, C) pre-transposed to (in, out); b1, b2: (1, C)."""
    N, C, L = x.shape
    x_item = jnp.dtype(x.dtype).itemsize
    w_item = jnp.dtype(w1.dtype).itemsize
    b_item = jnp.dtype(b1.dtype).itemsize

    vmem_cap, num_cores = _tpu_topology()

    # Grid-invariant weights/bias, double-buffered by the pipeline.
    weight_bytes = 2 * (2 * C * C * w_item + 2 * 2 * C * b_item)

    # Budget for streaming x/out blocks: in+out double buffers plus in-kernel
    # temporaries budgeted at f32 width (covers v5e's bf16->f32 VALU widening).
    # ~48 MiB cap when 2 TCs share the chip (v7x per-TC VMEM is 64 MiB).
    budget_cap = (48 << 20) if num_cores >= 2 else (64 << 20)
    block_budget = min(int(vmem_cap * 0.7), budget_cap) - weight_bytes - (2 << 20)
    block_budget = max(block_budget, 4 << 20)

    per_item_bytes = C * L * (4 * x_item + 3 * 4)   # per batch element in a block

    if per_item_bytes > block_budget:
        # One (1, C, L) slab alone exceeds the budget -> L-tiled reduce-then-apply.
        return _shrinkage_two_pass(x, w1, b1, w2, b2,
                                   vmem_cap=vmem_cap,
                                   block_budget=block_budget,
                                   weight_bytes=weight_bytes)

    bn_cap = max(1, block_budget // per_item_bytes)
    block_n = min(N, bn_cap)
    if num_cores >= 2 and N >= 2:
        # Keep >= num_cores grid steps so the "parallel" batch axis spans all TCs.
        block_n = min(block_n, _cdiv(N, num_cores))
    if block_n > 8:
        block_n = (block_n // 8) * 8   # native (8,128) sublane tiles on the FC path
    block_n = max(block_n, 1)

    grid_n = _cdiv(N, block_n)
    if num_cores >= 2 and grid_n > 1:
        grid_n = _cdiv(grid_n, num_cores) * num_cores   # equal work per TensorCore

    n_total = grid_n * block_n
    if n_total != N:
        # Zero rows produce zero outputs; sliced off below.
        x = jnp.pad(x, ((0, n_total - N), (0, 0), (0, 0)))

    need = (4 * block_n * C * L * x_item        # x + out blocks, double-buffered
            + 3 * block_n * C * L * 4           # in-kernel temporaries at f32 width
            + weight_bytes + (2 << 20))
    vmem_limit = int(min(vmem_cap, max(need, 16 << 20)))

    out = pl.pallas_call(
        shrinkage_kernel,
        out_shape=jax.ShapeDtypeStruct((n_total, C, L), x.dtype),
        grid_spec=pltpu.PrefetchScalarGridSpec(
            num_scalar_prefetch=0,
            grid=(grid_n,),
            in_specs=[
                pl.BlockSpec((block_n, C, L), lambda n: (n, 0, 0)),  # x
                pl.BlockSpec((C, C), lambda n: (0, 0)),              # w1 (in, out)
                pl.BlockSpec((1, C), lambda n: (0, 0)),              # b1
                pl.BlockSpec((C, C), lambda n: (0, 0)),              # w2 (in, out)
                pl.BlockSpec((1, C), lambda n: (0, 0)),              # b2
            ],
            out_specs=pl.BlockSpec((block_n, C, L), lambda n: (n, 0, 0)),
        ),
        compiler_params=pltpu.CompilerParams(
            dimension_semantics=("parallel",),
            vmem_limit_bytes=vmem_limit,
        ),
    )(x, w1, b1, w2, b2)

    if n_total != N:
        out = out[:N]
    return out


def _shrinkage_two_pass(x, w1, b1, w2, b2, *, vmem_cap, block_budget, weight_bytes):
    """Fallback for slabs larger than VMEM: L-tiled reduce pass then apply pass.

    Reads x from HBM twice; only used when a single (1, C, L) slab does not fit.
    """
    N, C, L = x.shape
    x_item = jnp.dtype(x.dtype).itemsize

    per_l_bytes = C * (4 * x_item + 3 * 4)
    tl = max(128, (block_budget // (per_l_bytes * 128)) * 128)
    tl = min(tl, _cdiv(L, 128) * 128)
    l_total = _cdiv(L, tl) * tl
    if l_total != L:
        # Zero-padding leaves sum(|x|) unchanged; mean divides by the true L.
        x = jnp.pad(x, ((0, 0), (0, 0), (0, l_total - L)))
    grid_l = l_total // tl

    # Pass 1: per-(n, c) threshold tau (f32), accumulated across L tiles.
    tau_limit = int(min(vmem_cap, max(
        2 * C * tl * x_item + 2 * C * tl * 4 + weight_bytes + (2 << 20), 16 << 20)))
    tau = pl.pallas_call(
        _make_tau_kernel(1.0 / L),
        out_shape=jax.ShapeDtypeStruct((N, C, 1), jnp.float32),
        grid_spec=pltpu.PrefetchScalarGridSpec(
            num_scalar_prefetch=0,
            grid=(N, grid_l),
            in_specs=[
                pl.BlockSpec((1, C, tl), lambda n, l: (n, 0, l)),    # x
                pl.BlockSpec((C, C), lambda n, l: (0, 0)),           # w1
                pl.BlockSpec((1, C), lambda n, l: (0, 0)),           # b1
                pl.BlockSpec((C, C), lambda n, l: (0, 0)),           # w2
                pl.BlockSpec((1, C), lambda n, l: (0, 0)),           # b2
            ],
            out_specs=pl.BlockSpec((1, C, 1), lambda n, l: (n, 0, 0)),
        ),
        compiler_params=pltpu.CompilerParams(
            dimension_semantics=("parallel", "arbitrary"),
            vmem_limit_bytes=tau_limit,
        ),
    )(x, w1, b1, w2, b2)

    # Pass 2: elementwise soft-threshold, fully parallel over (N, L tiles).
    apply_limit = int(min(vmem_cap, max(
        4 * C * tl * x_item + 2 * C * tl * 4 + (2 << 20), 16 << 20)))
    out = pl.pallas_call(
        _apply_kernel,
        out_shape=jax.ShapeDtypeStruct((N, C, l_total), x.dtype),
        grid_spec=pltpu.PrefetchScalarGridSpec(
            num_scalar_prefetch=0,
            grid=(N, grid_l),
            in_specs=[
                pl.BlockSpec((1, C, tl), lambda n, l: (n, 0, l)),    # x
                pl.BlockSpec((1, C, 1), lambda n, l: (n, 0, 0)),     # tau
            ],
            out_specs=pl.BlockSpec((1, C, tl), lambda n, l: (n, 0, l)),
        ),
        compiler_params=pltpu.CompilerParams(
            dimension_semantics=("parallel", "parallel"),
            vmem_limit_bytes=apply_limit,
        ),
    )(x, tau)

    if l_total != L:
        out = out[:, :, :L]
    return out


# ----------------------------------------------------------------------------
# Pure-JAX reference + demo
# ----------------------------------------------------------------------------
def shrinkage_ref(x, w1, b1, w2, b2):
    x_abs = jnp.abs(x)
    avg = jnp.mean(x_abs, axis=-1)                  # (N, C)
    h = jnp.maximum(avg @ w1 + b1, 0.0)
    s = jax.nn.sigmoid(h @ w2 + b2)
    tau = (avg * s)[:, :, None]
    return jnp.sign(x) * jnp.maximum(x_abs - tau, 0.0)


if __name__ == "__main__":
    # TODO(synk): gap_size > 1 would make the flattened feature size C*gap_size,
    # which is incompatible with Linear(channel, channel); only gap_size=1 is implemented.
    N, C, L = 2, 4, 16
    key = jax.random.PRNGKey(0)
    k1, k2, k3, k4, k5 = jax.random.split(key, 5)

    x = jax.random.normal(k1, (N, C, L), dtype=jnp.float32)

    # Deterministic parameter init (PyTorch Linear-style uniform bound = 1/sqrt(fan_in)).
    bound = 1.0 / (C ** 0.5)
    w1 = jax.random.uniform(k2, (C, C), minval=-bound, maxval=bound, dtype=jnp.float32)
    b1 = jax.random.uniform(k3, (1, C), minval=-bound, maxval=bound, dtype=jnp.float32)
    w2 = jax.random.uniform(k4, (C, C), minval=-bound, maxval=bound, dtype=jnp.float32)
    b2 = jax.random.uniform(k5, (1, C), minval=-bound, maxval=bound, dtype=jnp.float32)

    out = shrinkage(x, w1, b1, w2, b2)
    out = jax.block_until_ready(out)

    ref = shrinkage_ref(x, w1, b1, w2, b2)
    assert out.shape == (N, C, L)
    assert jnp.allclose(out, ref, atol=1e-5, rtol=1e-5), "mismatch vs reference"

    print("KERNEL_OK")
</pallas_src>

<mosaic_0001>
module attributes {stable_mosaic.version = 11 : i64} {
  func.func @shrinkage_kernel(%arg0: i32, %arg1: memref<2x4x16xf32, #tpu.memory_space<vmem>>, %arg2: memref<4x4xf32, #tpu.memory_space<vmem>>, %arg3: memref<1x4xf32, #tpu.memory_space<vmem>>, %arg4: memref<4x4xf32, #tpu.memory_space<vmem>>, %arg5: memref<1x4xf32, #tpu.memory_space<vmem>>, %arg6: memref<2x4x16xf32, #tpu.memory_space<vmem>>) attributes {dimension_semantics = [#tpu.dimension_semantics<parallel>], iteration_bounds = array<i64: 1>, scalar_prefetch = 0 : i64, scratch_operands = 0 : i64, tpu.core_type = #tpu.core_type<tc>, window_params = [{transform_indices = @transform_0, window_bounds = array<i64: 2, 4, 16>}, {pipeline_mode = #tpu.pipeline_mode<synchronous>, transform_indices = @transform_1, window_bounds = array<i64: 4, 4>}, {pipeline_mode = #tpu.pipeline_mode<synchronous>, transform_indices = @transform_2, window_bounds = array<i64: 1, 4>}, {pipeline_mode = #tpu.pipeline_mode<synchronous>, transform_indices = @transform_3, window_bounds = array<i64: 4, 4>}, {pipeline_mode = #tpu.pipeline_mode<synchronous>, transform_indices = @transform_4, window_bounds = array<i64: 1, 4>}, {transform_indices = @transform_5, window_bounds = array<i64: 2, 4, 16>}]} {
    %c0 = arith.constant 0 : index
    %c0_0 = arith.constant 0 : index
    %c0_1 = arith.constant 0 : index
    %0 = vector.load %arg1[%c0, %c0_0, %c0_1] : memref<2x4x16xf32, #tpu.memory_space<vmem>>, vector<2x4x16xf32>
    %1 = math.absf %0 : vector<2x4x16xf32>
    %cst = arith.constant dense<0.000000e+00> : vector<2x4xf32>
    %2 = vector.multi_reduction <add>, %1, %cst [2] : vector<2x4x16xf32> to vector<2x4xf32>
    %cst_2 = arith.constant 6.250000e-02 : f32
    %3 = vector.broadcast %cst_2 : f32 to vector<2x4xf32>
    %4 = arith.mulf %2, %3 : vector<2x4xf32>
    %c0_3 = arith.constant 0 : index
    %c0_4 = arith.constant 0 : index
    %5 = vector.load %arg2[%c0_3, %c0_4] : memref<4x4xf32, #tpu.memory_space<vmem>>, vector<4x4xf32>
    %cst_5 = arith.constant dense<0.000000e+00> : vector<2x4xf32>
    %6 = tpu.matmul %4, %5, %cst_5 {dimension_numbers = #tpu.dot_dimension_numbers<[1], [0], [0], [1], [0, 0, 1, 1], [], []>} : vector<2x4xf32>, vector<4x4xf32>, vector<2x4xf32> -> vector<2x4xf32>
    %c0_6 = arith.constant 0 : index
    %c0_7 = arith.constant 0 : index
    %7 = vector.load %arg3[%c0_6, %c0_7] : memref<1x4xf32, #tpu.memory_space<vmem>>, vector<1x4xf32>
    %8 = vector.broadcast %7 : vector<1x4xf32> to vector<2x4xf32>
    %9 = arith.addf %6, %8 : vector<2x4xf32>
    %cst_8 = arith.constant 0.000000e+00 : f32
    %10 = vector.broadcast %cst_8 : f32 to vector<2x4xf32>
    %11 = arith.maximumf %9, %10 : vector<2x4xf32>
    %c0_9 = arith.constant 0 : index
    %c0_10 = arith.constant 0 : index
    %12 = vector.load %arg4[%c0_9, %c0_10] : memref<4x4xf32, #tpu.memory_space<vmem>>, vector<4x4xf32>
    %cst_11 = arith.constant dense<0.000000e+00> : vector<2x4xf32>
    %13 = tpu.matmul %11, %12, %cst_11 {dimension_numbers = #tpu.dot_dimension_numbers<[1], [0], [0], [1], [0, 0, 1, 1], [], []>} : vector<2x4xf32>, vector<4x4xf32>, vector<2x4xf32> -> vector<2x4xf32>
    %c0_12 = arith.constant 0 : index
    %c0_13 = arith.constant 0 : index
    %14 = vector.load %arg5[%c0_12, %c0_13] : memref<1x4xf32, #tpu.memory_space<vmem>>, vector<1x4xf32>
    %15 = vector.broadcast %14 : vector<1x4xf32> to vector<2x4xf32>
    %16 = arith.addf %13, %15 : vector<2x4xf32>
    %17 = arith.negf %16 : vector<2x4xf32>
    %18 = math.exp %17 : vector<2x4xf32>
    %cst_14 = arith.constant 1.000000e+00 : f32
    %19 = vector.broadcast %cst_14 : f32 to vector<2x4xf32>
    %20 = arith.addf %19, %18 : vector<2x4xf32>
    %21 = arith.divf %19, %20 : vector<2x4xf32>
    %22 = arith.mulf %4, %21 : vector<2x4xf32>
    %23 = vector.shape_cast %22 : vector<2x4xf32> to vector<2x4x1xf32>
    %cst_15 = arith.constant 0.000000e+00 : f32
    %24 = vector.broadcast %cst_15 : f32 to vector<2x4x1xf32>
    %25 = arith.subf %24, %23 : vector<2x4x1xf32>
    %26 = vector.broadcast %25 : vector<2x4x1xf32> to vector<2x4x16xf32>
    %27 = arith.maximumf %26, %0 : vector<2x4x16xf32>
    %28 = vector.broadcast %23 : vector<2x4x1xf32> to vector<2x4x16xf32>
    %29 = arith.minimumf %28, %27 : vector<2x4x16xf32>
    %30 = arith.subf %0, %29 : vector<2x4x16xf32>
    %c0_16 = arith.constant 0 : index
    %c0_17 = arith.constant 0 : index
    %c0_18 = arith.constant 0 : index
    %31 = vector.load %arg6[%c0_16, %c0_17, %c0_18] : memref<2x4x16xf32, #tpu.memory_space<vmem>>, vector<2x4x16xf32>
    tpu.vector_store %arg6[%c0_16, %c0_17, %c0_18], %30 {strides = array<i32>} : memref<2x4x16xf32, #tpu.memory_space<vmem>>, vector<2x4x16xf32>,
    return
  }
  func.func @transform_0(%arg0: i32) -> (i32, i32, i32) {
    %c0_i32 = arith.constant 0 : i32
    %c0_i32_0 = arith.constant 0 : i32
    %c0_i32_1 = arith.constant 0 : i32
    return %arg0, %c0_i32, %c0_i32_0 : i32, i32, i32
  }
  func.func @transform_1(%arg0: i32) -> (i32, i32) {
    %c0_i32 = arith.constant 0 : i32
    %c0_i32_0 = arith.constant 0 : i32
    %c0_i32_1 = arith.constant 0 : i32
    return %c0_i32, %c0_i32_0 : i32, i32
  }
  func.func @transform_2(%arg0: i32) -> (i32, i32) {
    %c0_i32 = arith.constant 0 : i32
    %c0_i32_0 = arith.constant 0 : i32
    %c0_i32_1 = arith.constant 0 : i32
    return %c0_i32, %c0_i32_0 : i32, i32
  }
  func.func @transform_3(%arg0: i32) -> (i32, i32) {
    %c0_i32 = arith.constant 0 : i32
    %c0_i32_0 = arith.constant 0 : i32
    %c0_i32_1 = arith.constant 0 : i32
    return %c0_i32, %c0_i32_0 : i32, i32
  }
  func.func @transform_4(%arg0: i32) -> (i32, i32) {
    %c0_i32 = arith.constant 0 : i32
    %c0_i32_0 = arith.constant 0 : i32
    %c0_i32_1 = arith.constant 0 : i32
    return %c0_i32, %c0_i32_0 : i32, i32
  }
  func.func @transform_5(%arg0: i32) -> (i32, i32, i32) {
    %c0_i32 = arith.constant 0 : i32
    %c0_i32_0 = arith.constant 0 : i32
    %c0_i32_1 = arith.constant 0 : i32
    return %arg0, %c0_i32, %c0_i32_0 : i32, i32, i32
  }
}

</mosaic_0001>

<bundles_post_ra>
// kernel: tpu_custom_call.1
= control target key start
LH: loop header
LB: loop body
LE: loop exit
PB: predicated region body
PF: predicated region fallthrough
CT: control target
= control target key end

     0   :  { %10 = vsyncpa [#allocation3], 0  ;;  %s529_s0 = inlined_call_operand.hbm [shape: f32[2,4,16], index: 0, kind: input, shape index: {}]   ;;  %s530_s1 = inlined_call_operand.hbm [shape: f32[4,4], index: 1, kind: input, shape index: {}]   ;;  %s531_s2 = inlined_call_operand.vmem [shape: f32[1,4], index: 2, kind: input, shape index: {}]   ;;  %s532_s3 = inlined_call_operand.vmem [shape: f32[4,4], index: 3, kind: input, shape index: {}]   ;;  %s533_s4 = inlined_call_operand.vmem [shape: f32[1,4], index: 4, kind: input, shape index: {}]   ;;  %s534_s5 = inlined_call_operand.hbm [shape: f32[2,4,16], index: 5, kind: output, shape index: {}]  }
   0x1   :  { %11 = vsyncpa [#allocation6], 0 }
   0x2   :  { %12 = vsyncpa [#allocation4], 0  ;;  %s424_s18 = smov [#allocation2]   ;;  %s352_s22 = scalar_lea.hbm %s529_s0, 128 }
   0x3   :  { %s18_s19 = sshll.u32 %s424_s18, 4  ;;  %p353_p0 = scmp.ne.s32.totalorder %s529_s0, %s352_s22  ;;  %s19_s19 = int_to_ptr.vmem [resolvable:$true] %s18_s19 }
   0x4   :  { %p356_p1 = scmp.lt.u32.totalorder %s352_s22, %s529_s0 }
   0x6   :  { %p358_p2 = pnand %p356_p1, %p353_p0 }
   0x8   :  { %361 = shalt.err (!%p358_p2)
}
   0x9   :  { %s362_s27 = scalar_lea.vmem %s19_s19, 128  ;;  %p367_p4 = scmp.lt.s32.totalorder %s19_s19, %s19_s19 }
   0xa   :  { %p363_p3 = scmp.ne.s32.totalorder %s19_s19, %s362_s27  ;;  %p368_p5 = scmp.lt.s32.totalorder %s362_s27, %s362_s27 }
   0xc   :  { %p369_p6 = por %p368_p5, %p367_p4 }
   0xe   :  { %p370_p7 = pnand %p369_p6, %p363_p3 }
  0x10   :  { %373 = shalt.err (!%p370_p7)
}
  0x11   :  { %s425_s28 = smov 64   ;;  %s426_s29 = smov 4  }
  0x12   :  { %24 = dma.hbm_to_vmem [thread:$0]  %s529_s0, 128, %s19_s19, [#allocation3], %s425_s28, %s425_s28, %s426_s29  }
  0x13   :  { %s427_s7 = smov [#allocation5]   ;;  %s374_s11 = scalar_lea.hbm %s530_s1, 64 }
  0x14   :  { %s31_s8 = sshll.u32 %s427_s7, 4  ;;  %p375_p8 = scmp.ne.s32.totalorder %s530_s1, %s374_s11  ;;  %s32_s8 = int_to_ptr.vmem [resolvable:$true] %s31_s8 }
  0x15   :  { %p378_p9 = scmp.lt.u32.totalorder %s374_s11, %s530_s1 }
  0x17   :  { %p380_p10 = pnand %p378_p9, %p375_p8 }
  0x19   :  { %383 = shalt.err (!%p380_p10)
}
  0x1a   :  { %s384_s16 = scalar_lea.vmem %s32_s8, 64  ;;  %p389_p12 = scmp.lt.s32.totalorder %s32_s8, %s32_s8 }
  0x1b   :  { %p385_p11 = scmp.ne.s32.totalorder %s32_s8, %s384_s16  ;;  %p390_p13 = scmp.lt.s32.totalorder %s384_s16, %s384_s16 }
  0x1d   :  { %p391_p0 = por %p390_p13, %p389_p12 }
  0x1f   :  { %p392_p1 = pnand %p391_p0, %p385_p11 }
  0x21   :  { %395 = shalt.err (!%p392_p1)
}
  0x22   :  { %34 = dma.hbm_to_vmem [thread:$0]  %s530_s1, 64, %s32_s8, [#allocation6]  }
  0x23   :  { %418 = dma.done.wait [#allocation3], 128  }
  0x24   :  { %419 = vsyncadd [#allocation3], 4294967168 }
  0x25   :  { %420 = dma.done.wait [#allocation6], 64  }
  0x26   :  { %421 = vsyncadd [#allocation6], 4294967232  ;;  %v489_v0 = vld [vmem:[#allocation2] sm:$0xf]  ;;  %vm51_vm0 = vcmask 125952   ;;  %vm85_vm1 = vcmask 1043456   ;;  %v70_v8 = vlaneseq }
  0x27   :  { %v491_v1 = vld [vmem:[#allocation2 + $0x4] sm:$0xf]  ;;  %v49_v2 = vand.u32 2147483647, %v489_v0  ;;  %v60_v6 = vld [vmem:[#allocation5] sm:$0xf] }
  0x28   :  { %v50_v3 = vand.u32 2147483647, %v491_v1  ;;  %v428_v7 = vmov 0.0   ;;  %vm429_vm2 = vmmov 0   ;;  %v71_v9 = vand.u32 127, %v70_v8 }
  0x29   :  { %v52_v4 = vsel %vm51_vm0, %v49_v2, 0.0  ;;  %328 = vmatprep.subr.mxu0 %v428_v7  ;;  %330 = vmatprep.mubr.msk.f32.mxu0 %vm429_vm2, %v428_v7  ;;  %v73_v10 = vshrl.u32 %v70_v8, 7  ;;  %vm80_vm3 = vcmask 1041409   ;;  %vm82_vm4 = vcmask 31744   ;;  %v160_v19 = vld [vmem:[%s532_s3] sm:$0xf] }
  0x2a   :  { %53 = vadd.xlane.f32.xlu0 %v52_v4  ;;  %v55_v5 = vsel %vm51_vm0, %v50_v3, 0.0  ;;  %329 = vmatpush3.msk.msra.mxu0 %vm85_vm1, %v60_v6  ;;  %v317_v20 = vld [vmem:[%s531_s2] ss:$0 sm:$0xff]  ;;  %v430_v32 = vmov 0   ;;  %s431_s2 = smov [#allocation7]  }
  0x2b   :  { %333 = vmatprep.subr.mxu1 %v428_v7  ;;  %335 = vmatprep.mubr.msk.f32.mxu1 %vm429_vm2, %v428_v7  ;;  %v74_v12 = vsub.s32 %v71_v9, %v73_v10  ;;  %v320_v25 = vld [vmem:[%s533_s4] ss:$0 sm:$0xff]  ;;  %v253_v33 = vsub.s32 0, %v73_v10  ;;  %v260_v36 = vsub.s32 1, %v73_v10  ;;  %s304_s3 = sshll.u32 %s431_s2, 4  ;;  %s305_s3 = int_to_ptr.vmem [resolvable:$true] %s304_s3 }
  0x2c   :  { %334 = vmatpush3.msk.msra.mxu1 %vm85_vm1, %v160_v19  ;;  %347 = vset.pattern.permute.xlu1 %v430_v32  ;;  %s396_s4 = scalar_lea.vmem %s305_s3, 128  ;;  %p401_p3 = scmp.lt.s32.totalorder %s305_s3, %s305_s3 }
  0x2d   :  { %346 = vset.pattern.permute.xlu0 %v430_v32  ;;  %p397_p2 = scmp.ne.s32.totalorder %s305_s3, %s396_s4  ;;  %p402_p4 = scmp.lt.s32.totalorder %s396_s4, %s396_s4 }
  0x2e   :  { %56 = vadd.xlane.f32.xlu0 %v55_v5 }
  0x2f   :  { %p403_p5 = por %p402_p4, %p401_p3 }
  0x31   :  { %p404_p6 = pnand %p403_p5, %p397_p2 }
  0xb7   :  { %v54_v11 = vpop.xlane.xlu0 %53 }
  0xb8   :  { %v58_v13 = vmul.f32 0.0625, %v54_v11 }
  0xba   :  { %v75_v16 = vrot.slane %v58_v13, %v74_v12 }
  0xbb   :  { %v57_v14 = vpop.xlane.xlu0 %56 }
  0xbc   :  { %v59_v15 = vmul.f32 0.0625, %v57_v14 }
  0xbe   :  { %v79_v17 = vrot.slane %v59_v15, %v74_v12 }
  0xc0   :  { %v81_v18 = vsel %vm80_vm3, %v79_v17, %v75_v16 }
  0xc1   :  { %331 = vmatmul.mubr.msk.f32.vlgmr.msra.gmra.mrb[0].mxu0 %vm82_vm4, %v81_v18 }
 0x194   :  { %v155_v21 = vpop.f32.mrb[0].mxu0 }
 0x195   :  { %v156_v22 = vadd.f32 %v317_v20, %v155_v21  ;;  %v332_v23 = vpop.f32.mrb[1].mxu0 }
 0x197   :  { %v159_v24 = vmax.f32 %v156_v22, 0.0 }
 0x199   :  { %336 = vmatmul.mubr.msk.f32.vlgmr.msra.gmra.mrb[0].mxu1 %vm82_vm4, %v159_v24 }
 0x26c   :  { %v240_v26 = vpop.f32.mrb[0].mxu1 }
 0x26d   :  { %v241_v27 = vadd.f32 %v320_v25, %v240_v26  ;;  %v337_v28 = vpop.f32.mrb[1].mxu1 }
 0x26f   :  { %v323_v29 = vmul.f32 -1.442695, %v241_v27 }
 0x271   :  { %348 = vpow2.f32 %v323_v29 }
 0x27b   :  { %v349_v30 = vpop.eup %348 }
 0x27c   :  { %v247_v31 = vadd.f32 1.0, %v349_v30 }
 0x27e   :  { %350 = vrcp.f32 %v247_v31 }
 0x288   :  { %v351_v34 = vpop.eup %350 }
 0x289   :  { %v254_v35 = vrot.slane %v351_v34, %v253_v33  ;;  %v261_v37 = vrot.slane %v351_v34, %v260_v36 }
 0x28b   :  { %256 = vbcast.lane.b32.xlu1 %v254_v35, 256 }
 0x28f   :  { %263 = vbcast.lane.b32.xlu1 %v261_v37, 256 }
 0x2fd   :  { %v257_v38 = vpop.permute.xlu1 %256 }
 0x2fe   :  { %v267_v39 = vmul.f32 %v257_v38, %v58_v13 }
 0x300   :  { %v269_v40 = vsub.f32 0.0, %v267_v39  ;;  %285 = vperm.xlu1 %347, %v267_v39  }
 0x301   :  { %v264_v41 = vpop.permute.xlu1 %263 }
 0x302   :  { %v268_v42 = vmul.f32 %v264_v41, %v59_v15  ;;  %273 = vperm.xlu0 %346, %v269_v40  }
 0x304   :  { %v270_v43 = vsub.f32 0.0, %v268_v42 }
 0x306   :  { %278 = vperm.xlu1 %347, %v270_v43  }
 0x30a   :  { %290 = vperm.xlu1 %347, %v268_v42  }
 0x37f   :  { %v286_v44 = vpop.permute.xlu1 %285 }
 0x381   :  { %v274_v45 = vpop.permute.xlu0 %273 }
 0x382   :  { %v281_v46 = vmax.f32 %v274_v45, %v489_v0 }
 0x384   :  { %v293_v47 = vmin.f32 %v286_v44, %v281_v46 }
 0x385   :  { %v279_v48 = vpop.permute.xlu1 %278 }
 0x386   :  { %v295_v49 = vsub.f32 %v489_v0, %v293_v47  ;;  %v282_v50 = vmax.f32 %v279_v48, %v491_v1 }
 0x388   :  { %297 = vst.msk [vmem:[#allocation7] sm:$0xf] %vm51_vm0, %v295_v49 }
 0x389   :  { %v291_v51 = vpop.permute.xlu1 %290 }
 0x38a   :  { %v294_v52 = vmin.f32 %v291_v51, %v282_v50 }
 0x38c   :  { %v296_v53 = vsub.f32 %v491_v1, %v294_v52 }
 0x38e   :  { %298 = vst.msk [vmem:[#allocation7 + $0x4] sm:$0xf] %vm51_vm0, %v296_v53 }
 0x38f   :  { %407 = shalt.err (!%p404_p6)
}
 0x390   :  { %s408_s25 = scalar_lea.hbm %s534_s5, 128 }
 0x391   :  { %p409_p7 = scmp.ne.s32.totalorder %s534_s5, %s408_s25  ;;  %p412_p8 = scmp.lt.u32.totalorder %s408_s25, %s534_s5 }
 0x393   :  { %p414_p9 = pnand %p412_p8, %p409_p7 }
 0x395   :  { %417 = shalt.err (!%p414_p9)
}
 0x396   :  { %310 = dma.vmem_to_hbm [thread:$0]  %s305_s3, 128, %s534_s5, [#allocation4], %s425_s28, %s425_s28, %s426_s29  }
 0x397   :  { %422 = dma.done.wait [#allocation4], 128  }
 0x398   :  { %423 = vsyncadd [#allocation4], 4294967168 }
 0x399   :  { %314 = vsyncpa [#allocation3], 1 }
 0x39a   :  { %315 = vsyncpa [#allocation6], 1 }
 0x39b   :  { %316 = vsyncpa [#allocation4], 1 }

</bundles_post_ra>
